<compile_context>
chip_gen: v6e
topology: v6e:2x2x1
jax: 0.10.0
libtpu: 0.0.40
codegen_flags: <defaults>
</compile_context>

<pallas_src>
import jax
import jax.numpy as jnp
from jax.experimental import pallas as pl
from jax.experimental.pallas import tpu as pltpu


def _maker_kernel(x_ref, pw_ref, wr_ref, gama_ref, o_ref):
    # x_ref    : (TB, VQ)    bf16  -- one batch tile of evidence
    # pw_ref   : (H, VQ)     bf16  -- p_h_v_q * W_m (hoisted in wrapper)
    # wr_ref   : (H, VQ)     f32   -- reliabilities
    # gama_ref : (VQ, VQ)    bf16  -- coupling matrix (MXU RHS, stays resident)
    # o_ref    : (TB, H*VQ)  f32   -- lane-dense output slab
    h, _ = pw_ref.shape

    x = x_ref[...]        # (TB, VQ) bf16
    pw = pw_ref[...]      # (H, VQ)  bf16
    wr = wr_ref[...]      # (H, VQ)  f32
    g = gama_ref[...]     # (VQ, VQ) bf16

    r_heads = []
    denom = None
    # H is small and static -> Python unroll; gama stays resident as the MXU RHS
    # across the H back-to-back matmuls.
    for head in range(h):
        m_h = x * pw[head:head + 1, :]                                   # VPU, bf16
        s_h = jnp.dot(m_h, g, preferred_element_type=jnp.float32)        # MXU, f32 acc
        r_h = s_h * wr[head:head + 1, :]                                 # VPU, f32
        r_heads.append(r_h)
        denom = r_h if denom is None else denom + r_h

    inv = pl.reciprocal(denom + jnp.float32(1e-9), approx=True)          # EUP
    out = jnp.concatenate([r_h * inv for r_h in r_heads], axis=1)        # (TB, H*VQ)
    o_ref[...] = out.astype(o_ref.dtype)


def _choose_batch_tile(b, h, vq, budget_bytes=24 << 20):
    """Pick a batch tile: as large as VMEM comfortably allows, capped at 512."""
    # Per-batch-row bytes inside one grid step:
    #   double-buffered bf16 x + double-buffered f32 out + f32 temporaries (r/s/out).
    per_row = 2 * vq * 2 + 2 * h * vq * 4 + 3 * h * vq * 4
    # Grid-invariant operands (double-buffered conservatively) + bf16 gama.
    fixed = 2 * (h * vq * 2 + h * vq * 4) + 2 * vq * vq * 2
    tb = int(max(8, (budget_bytes - fixed) // max(1, per_row)))
    tb = min(tb, 512)
    if b <= tb:
        return b, per_row, fixed          # single step; block == full batch extent
    tb = max(8, (tb // 8) * 8)            # sublane-aligned tiles for multi-step grids
    return tb, per_row, fixed


def maker_forward(x, p_hvq, w_m, w_r, gama):
    """x: (B, dim_v, dim_q); params per MAKER.__init__.  Returns (B, H, dim_v, dim_q)."""
    B, V, Q = x.shape
    H = p_hvq.shape[0]
    VQ = V * Q

    TB, per_row, fixed = _choose_batch_tile(B, H, VQ)
    grid = (pl.cdiv(B, TB),)

    # Wrapper-side prep (all cheap, grid-invariant math hoisted out of the kernel).
    x_bf = x.reshape(B, VQ).astype(jnp.bfloat16)
    pw_bf = (p_hvq * w_m).reshape(H, VQ).astype(jnp.bfloat16)
    wr_f = w_r.reshape(H, VQ).astype(jnp.float32)
    g_bf = gama.reshape(VQ, VQ).astype(jnp.bfloat16)

    # Always set the scoped VMEM limit explicitly (v5e default is only 16 MiB);
    # cap at 48 MiB to leave headroom under v7x's 64 MiB physical VMEM.
    est_bytes = fixed + TB * per_row
    vmem_limit = int(min(48 << 20, max(int(est_bytes * 1.5), 32 << 20)))

    cost = pl.CostEstimate(
        flops=2 * B * H * VQ * VQ + 5 * B * H * VQ,
        transcendentals=B * VQ,
        bytes_accessed=(B * VQ * 2            # x (bf16)
                        + H * VQ * 2          # pw (bf16)
                        + H * VQ * 4          # W_r (f32)
                        + VQ * VQ * 2         # gama (bf16)
                        + B * H * VQ * 4),    # output (f32)
    )

    call = pl.pallas_call(
        _maker_kernel,
        out_shape=jax.ShapeDtypeStruct((B, H * VQ), jnp.float32),
        grid=grid,
        in_specs=[
            pl.BlockSpec((TB, VQ), lambda b: (b, 0)),   # x, batch-tiled
            pl.BlockSpec((H, VQ), lambda b: (0, 0)),    # pw  (grid-invariant)
            pl.BlockSpec((H, VQ), lambda b: (0, 0)),    # W_r (grid-invariant)
            pl.BlockSpec((VQ, VQ), lambda b: (0, 0)),   # gama (grid-invariant, bf16)
        ],
        out_specs=pl.BlockSpec((TB, H * VQ), lambda b: (b, 0)),
        compiler_params=pltpu.CompilerParams(
            dimension_semantics=("parallel",),
            vmem_limit_bytes=vmem_limit,
        ),
        cost_estimate=cost,
    )

    out = call(x_bf, pw_bf, wr_f, g_bf)
    # Free reshape: (B, H*V*Q) -> (B, H, V, Q) (row-major, no transpose).
    return out.reshape(B, H, V, Q)


def maker_reference(x, p_hvq, w_m, w_r, gama):
    """Pure-JAX (f32) reference of the same computation."""
    m = p_hvq[None] * w_m[None] * x[:, None]                       # (B,H,V,Q)
    s = jnp.einsum("bhvq,vqwr->bhwr", m, gama)                     # (B,H,V,Q)
    r = w_r[None] * s
    denom = jnp.sum(r, axis=1, keepdims=True) + 1e-9
    return r / denom


if __name__ == "__main__":
    # Small shapes consistent with forward(): input (batch, dim_v, dim_q)
    B, H, V, Q = 2, 4, 8, 16   # VQ = 128 -> one full lane row

    key = jax.random.PRNGKey(0)
    k_x, k_p, k_wm, k_wr, k_g = jax.random.split(key, 5)

    x = jax.random.uniform(k_x, (B, V, Q), dtype=jnp.float32)
    # Deterministic parameter init, mirroring init.uniform(param, 0, 1)
    p_hvq = jax.random.uniform(k_p, (H, V, Q), dtype=jnp.float32)
    w_m = jax.random.uniform(k_wm, (H, V, Q), dtype=jnp.float32)
    w_r = jax.random.uniform(k_wr, (H, V, Q), dtype=jnp.float32)
    gama = jax.random.uniform(k_g, (V, Q, V, Q), dtype=jnp.float32)

    out = maker_forward(x, p_hvq, w_m, w_r, gama)
    out = jax.block_until_ready(out)

    ref = maker_reference(x, p_hvq, w_m, w_r, gama)
    assert out.shape == (B, H, V, Q)
    # bf16 MXU inputs (x, p*W_m, gama) + approximate reciprocal -> loosened
    # tolerance vs the f32 reference.
    assert jnp.allclose(out, ref, atol=2e-2, rtol=2e-2), "mismatch vs JAX reference"

    print("KERNEL_OK")
</pallas_src>

<mosaic_0001>
module attributes {stable_mosaic.version = 11 : i64} {
  func.func @_maker_kernel(%arg0: i32, %arg1: memref<2x128xbf16, #tpu.memory_space<vmem>>, %arg2: memref<4x128xbf16, #tpu.memory_space<vmem>>, %arg3: memref<4x128xf32, #tpu.memory_space<vmem>>, %arg4: memref<128x128xbf16, #tpu.memory_space<vmem>>, %arg5: memref<2x512xf32, #tpu.memory_space<vmem>>) attributes {dimension_semantics = [#tpu.dimension_semantics<parallel>], iteration_bounds = array<i64: 1>, scalar_prefetch = 0 : i64, scratch_operands = 0 : i64, tpu.core_type = #tpu.core_type<tc>, window_params = [{transform_indices = @transform_0, window_bounds = array<i64: 2, 128>}, {pipeline_mode = #tpu.pipeline_mode<synchronous>, transform_indices = @transform_1, window_bounds = array<i64: 4, 128>}, {pipeline_mode = #tpu.pipeline_mode<synchronous>, transform_indices = @transform_2, window_bounds = array<i64: 4, 128>}, {pipeline_mode = #tpu.pipeline_mode<synchronous>, transform_indices = @transform_3, window_bounds = array<i64: 128, 128>}, {transform_indices = @transform_4, window_bounds = array<i64: 2, 512>}]} {
    %c0 = arith.constant 0 : index
    %c0_0 = arith.constant 0 : index
    %0 = vector.load %arg1[%c0, %c0_0] : memref<2x128xbf16, #tpu.memory_space<vmem>>, vector<2x128xbf16>
    %c0_1 = arith.constant 0 : index
    %c0_2 = arith.constant 0 : index
    %1 = vector.load %arg2[%c0_1, %c0_2] : memref<4x128xbf16, #tpu.memory_space<vmem>>, vector<4x128xbf16>
    %c0_3 = arith.constant 0 : index
    %c0_4 = arith.constant 0 : index
    %2 = vector.load %arg3[%c0_3, %c0_4] : memref<4x128xf32, #tpu.memory_space<vmem>>, vector<4x128xf32>
    %c0_5 = arith.constant 0 : index
    %c0_6 = arith.constant 0 : index
    %3 = vector.load %arg4[%c0_5, %c0_6] : memref<128x128xbf16, #tpu.memory_space<vmem>>, vector<128x128xbf16>
    %4 = vector.extract_strided_slice %1 {offsets = [0, 0], sizes = [1, 128], strides = [1, 1]} : vector<4x128xbf16> to vector<1x128xbf16>
    %5 = vector.broadcast %4 : vector<1x128xbf16> to vector<2x128xbf16>
    %6 = arith.mulf %0, %5 : vector<2x128xbf16>
    %cst = arith.constant dense<0.000000e+00> : vector<2x128xf32>
    %7 = tpu.matmul %6, %3, %cst {dimension_numbers = #tpu.dot_dimension_numbers<[1], [0], [0], [1], [0, 0, 1, 1], [], []>} : vector<2x128xbf16>, vector<128x128xbf16>, vector<2x128xf32> -> vector<2x128xf32>
    %8 = vector.extract_strided_slice %2 {offsets = [0, 0], sizes = [1, 128], strides = [1, 1]} : vector<4x128xf32> to vector<1x128xf32>
    %9 = vector.broadcast %8 : vector<1x128xf32> to vector<2x128xf32>
    %10 = arith.mulf %7, %9 : vector<2x128xf32>
    %11 = vector.extract_strided_slice %1 {offsets = [1, 0], sizes = [1, 128], strides = [1, 1]} : vector<4x128xbf16> to vector<1x128xbf16>
    %12 = vector.broadcast %11 : vector<1x128xbf16> to vector<2x128xbf16>
    %13 = arith.mulf %0, %12 : vector<2x128xbf16>
    %cst_7 = arith.constant dense<0.000000e+00> : vector<2x128xf32>
    %14 = tpu.matmul %13, %3, %cst_7 {dimension_numbers = #tpu.dot_dimension_numbers<[1], [0], [0], [1], [0, 0, 1, 1], [], []>} : vector<2x128xbf16>, vector<128x128xbf16>, vector<2x128xf32> -> vector<2x128xf32>
    %15 = vector.extract_strided_slice %2 {offsets = [1, 0], sizes = [1, 128], strides = [1, 1]} : vector<4x128xf32> to vector<1x128xf32>
    %16 = vector.broadcast %15 : vector<1x128xf32> to vector<2x128xf32>
    %17 = arith.mulf %14, %16 : vector<2x128xf32>
    %18 = arith.addf %10, %17 : vector<2x128xf32>
    %19 = vector.extract_strided_slice %1 {offsets = [2, 0], sizes = [1, 128], strides = [1, 1]} : vector<4x128xbf16> to vector<1x128xbf16>
    %20 = vector.broadcast %19 : vector<1x128xbf16> to vector<2x128xbf16>
    %21 = arith.mulf %0, %20 : vector<2x128xbf16>
    %cst_8 = arith.constant dense<0.000000e+00> : vector<2x128xf32>
    %22 = tpu.matmul %21, %3, %cst_8 {dimension_numbers = #tpu.dot_dimension_numbers<[1], [0], [0], [1], [0, 0, 1, 1], [], []>} : vector<2x128xbf16>, vector<128x128xbf16>, vector<2x128xf32> -> vector<2x128xf32>
    %23 = vector.extract_strided_slice %2 {offsets = [2, 0], sizes = [1, 128], strides = [1, 1]} : vector<4x128xf32> to vector<1x128xf32>
    %24 = vector.broadcast %23 : vector<1x128xf32> to vector<2x128xf32>
    %25 = arith.mulf %22, %24 : vector<2x128xf32>
    %26 = arith.addf %18, %25 : vector<2x128xf32>
    %27 = vector.extract_strided_slice %1 {offsets = [3, 0], sizes = [1, 128], strides = [1, 1]} : vector<4x128xbf16> to vector<1x128xbf16>
    %28 = vector.broadcast %27 : vector<1x128xbf16> to vector<2x128xbf16>
    %29 = arith.mulf %0, %28 : vector<2x128xbf16>
    %cst_9 = arith.constant dense<0.000000e+00> : vector<2x128xf32>
    %30 = tpu.matmul %29, %3, %cst_9 {dimension_numbers = #tpu.dot_dimension_numbers<[1], [0], [0], [1], [0, 0, 1, 1], [], []>} : vector<2x128xbf16>, vector<128x128xbf16>, vector<2x128xf32> -> vector<2x128xf32>
    %31 = vector.extract_strided_slice %2 {offsets = [3, 0], sizes = [1, 128], strides = [1, 1]} : vector<4x128xf32> to vector<1x128xf32>
    %32 = vector.broadcast %31 : vector<1x128xf32> to vector<2x128xf32>
    %33 = arith.mulf %30, %32 : vector<2x128xf32>
    %34 = arith.addf %26, %33 : vector<2x128xf32>
    %cst_10 = arith.constant 9.99999971E-10 : f32
    %35 = vector.broadcast %cst_10 : f32 to vector<2x128xf32>
    %36 = arith.addf %34, %35 : vector<2x128xf32>
    %37 = tpu.reciprocal %36 {approx = true} : vector<2x128xf32> -> vector<2x128xf32>
    %38 = arith.mulf %10, %37 : vector<2x128xf32>
    %39 = arith.mulf %17, %37 : vector<2x128xf32>
    %40 = arith.mulf %25, %37 : vector<2x128xf32>
    %41 = arith.mulf %33, %37 : vector<2x128xf32>
    %42 = tpu.concatenate %38, %39, %40, %41 in 1 : vector<2x128xf32>, vector<2x128xf32>, vector<2x128xf32>, vector<2x128xf32> -> vector<2x512xf32>
    %c0_11 = arith.constant 0 : index
    %c0_12 = arith.constant 0 : index
    %43 = vector.load %arg5[%c0_11, %c0_12] : memref<2x512xf32, #tpu.memory_space<vmem>>, vector<2x512xf32>
    tpu.vector_store %arg5[%c0_11, %c0_12], %42 {strides = array<i32>} : memref<2x512xf32, #tpu.memory_space<vmem>>, vector<2x512xf32>,
    return
  }
  func.func @transform_0(%arg0: i32) -> (i32, i32) {
    %c0_i32 = arith.constant 0 : i32
    %c0_i32_0 = arith.constant 0 : i32
    return %arg0, %c0_i32 : i32, i32
  }
  func.func @transform_1(%arg0: i32) -> (i32, i32) {
    %c0_i32 = arith.constant 0 : i32
    %c0_i32_0 = arith.constant 0 : i32
    %c0_i32_1 = arith.constant 0 : i32
    return %c0_i32, %c0_i32_0 : i32, i32
  }
  func.func @transform_2(%arg0: i32) -> (i32, i32) {
    %c0_i32 = arith.constant 0 : i32
    %c0_i32_0 = arith.constant 0 : i32
    %c0_i32_1 = arith.constant 0 : i32
    return %c0_i32, %c0_i32_0 : i32, i32
  }
  func.func @transform_3(%arg0: i32) -> (i32, i32) {
    %c0_i32 = arith.constant 0 : i32
    %c0_i32_0 = arith.constant 0 : i32
    %c0_i32_1 = arith.constant 0 : i32
    return %c0_i32, %c0_i32_0 : i32, i32
  }
  func.func @transform_4(%arg0: i32) -> (i32, i32) {
    %c0_i32 = arith.constant 0 : i32
    %c0_i32_0 = arith.constant 0 : i32
    return %arg0, %c0_i32 : i32, i32
  }
}

</mosaic_0001>

<bundles_post_ra>
// kernel: tpu_custom_call.1
= control target key start
LH: loop header
LB: loop body
LE: loop exit
PB: predicated region body
PF: predicated region fallthrough
CT: control target
= control target key end

     0   :  { %9 = vsyncpa [#allocation3], 0  ;;  %s744_s0 = inlined_call_operand.hbm [shape: bf16[2,128], index: 0, kind: input, shape index: {}]   ;;  %s745_s1 = inlined_call_operand.hbm [shape: bf16[4,128], index: 1, kind: input, shape index: {}]   ;;  %s746_s2 = inlined_call_operand.hbm [shape: f32[4,128], index: 2, kind: input, shape index: {}]   ;;  %s747_s3 = inlined_call_operand.hbm [shape: bf16[128,128], index: 3, kind: input, shape index: {}]   ;;  %s748_s4 = inlined_call_operand.hbm [shape: f32[2,512], index: 4, kind: output, shape index: {}]  }
   0x1   :  { %10 = vsyncpa [#allocation6], 0 }
   0x2   :  { %11 = vsyncpa [#allocation9], 0 }
   0x3   :  { %12 = vsyncpa [#allocation4], 0  ;;  %s642_s15 = smov [#allocation5]   ;;  %s643_s17 = smov [#allocation2]  }
   0x4   :  { %s29_s16 = sshll.u32 %s642_s15, 4  ;;  %s19_s18 = sshll.u32 %s643_s17, 4  ;;  %s30_s16 = int_to_ptr.vmem [resolvable:$true] %s29_s16  ;;  %s20_s18 = int_to_ptr.vmem [resolvable:$true] %s19_s18 }
   0x5   :  { %s542_s19 = scalar_lea.vmem %s30_s16, 32  ;;  %p547_p1 = scmp.lt.s32.totalorder %s30_s16, %s30_s16 }
   0x6   :  { %p543_p0 = scmp.ne.s32.totalorder %s30_s16, %s542_s19  ;;  %p548_p2 = scmp.lt.s32.totalorder %s542_s19, %s542_s19 }
   0x8   :  { %p549_p3 = por %p548_p2, %p547_p1 }
   0xa   :  { %p550_p4 = pnand %p549_p3, %p543_p0 }
   0xc   :  { %553 = shalt.err (!%p550_p4)
}
   0xd   :  { %32 = dma.hbm_to_vmem [thread:$0]  %s745_s1, 32, %s30_s16, [#allocation6]  }
   0xe   :  { %s562_s22 = scalar_lea.vmem %s20_s18, 16  ;;  %s566_s23 = scalar_lea.vmem %s20_s18, 32 }
   0xf   :  { %p563_p5 = scmp.ne.s32.totalorder %s20_s18, %s562_s22  ;;  %p567_p6 = scmp.lt.s32.totalorder %s20_s18, %s20_s18 }
  0x10   :  { %p568_p7 = scmp.lt.s32.totalorder %s566_s23, %s562_s22 }
  0x12   :  { %p569_p8 = por %p568_p7, %p567_p6 }
  0x14   :  { %p570_p9 = pnand %p569_p8, %p563_p5 }
  0x16   :  { %573 = shalt.err (!%p570_p9)
}
  0x17   :  { %22 = dma.hbm_to_vmem [thread:$0]  %s744_s0, 16, %s20_s18, [#allocation3]  }
  0x18   :  { %s644_s26 = smov [#allocation7]   ;;  %s645_s28 = smov [#allocation8]  }
  0x19   :  { %s39_s27 = sshll.u32 %s644_s26, 4  ;;  %s48_s29 = sshll.u32 %s645_s28, 4  ;;  %s40_s27 = int_to_ptr.vmem [resolvable:$true] %s39_s27  ;;  %s49_s29 = int_to_ptr.vmem [resolvable:$true] %s48_s29 }
  0x1a   :  { %s582_s30 = scalar_lea.vmem %s40_s27, 64  ;;  %p587_p11 = scmp.lt.s32.totalorder %s40_s27, %s40_s27 }
  0x1b   :  { %p583_p10 = scmp.ne.s32.totalorder %s40_s27, %s582_s30  ;;  %p588_p12 = scmp.lt.s32.totalorder %s582_s30, %s582_s30 }
  0x1d   :  { %p589_p13 = por %p588_p12, %p587_p11 }
  0x1f   :  { %p590_p0 = pnand %p589_p13, %p583_p10 }
  0x21   :  { %593 = shalt.err (!%p590_p0)
}
  0x22   :  { %42 = dma.hbm_to_vmem [thread:$0]  %s746_s2, 64, %s40_s27, [#allocation6]  }
  0x23   :  { %s602_s6 = scalar_lea.vmem %s49_s29, 1024  ;;  %p607_p2 = scmp.lt.s32.totalorder %s49_s29, %s49_s29 }
  0x24   :  { %p603_p1 = scmp.ne.s32.totalorder %s49_s29, %s602_s6  ;;  %p608_p3 = scmp.lt.s32.totalorder %s602_s6, %s602_s6 }
  0x26   :  { %p609_p4 = por %p608_p3, %p607_p2 }
  0x28   :  { %p610_p5 = pnand %p609_p4, %p603_p1 }
  0x2a   :  { %613 = shalt.err (!%p610_p5)
}
  0x2b   :  { %s646_s0 = smov 64   ;;  %s647_s7 = smov 4  }
  0x2c   :  { %54 = dma.hbm_to_vmem [thread:$0]  %s747_s3, 1024, %s49_s29, [#allocation9], %s646_s0, %s646_s0, %s647_s7  }
  0x2d   :  { %634 = dma.done.wait [#allocation3], 16  }
  0x2e   :  { %635 = vsyncadd [#allocation3], 4294967280 }
  0x2f   :  { %636 = dma.done.wait [#allocation6], 96  }
  0x30   :  { %637 = vsyncadd [#allocation6], 4294967200 }
  0x31   :  { %638 = dma.done.wait [#allocation9], 1024  }
  0x32   :  { %639 = vsyncadd [#allocation9], 4294966272  ;;  %v648_v0 = vmov 0.0   ;;  %vm649_vm0 = vmmov 0   ;;  %v524_v1 = vld [vmem:[#allocation8 + $0x38] sm:$0xff]   ;;  %v525_v2 = vld [vmem:[#allocation8 + $0x30] sm:$0xff]   ;;  %v90_v5 = vlaneseq }
  0x33   :  { %434 = vmatprep.subr.bf16.mxu0 %v648_v0  ;;  %454 = vmatprep.subr.bf16.mxu1 %v648_v0  ;;  %v526_v3 = vld [vmem:[#allocation8 + $0x28] sm:$0xff]   ;;  %v527_v4 = vld [vmem:[#allocation8 + $0x20] sm:$0xff]   ;;  %v528_v6 = vld [vmem:[#allocation8 + $0x18] sm:$0xff]   ;;  %v650_v57 = vmov 1983009808   ;;  %s651_s2 = smov [#allocation10]  }
  0x34   :  { %450 = vmatprep.mubr.msk.bf16.mxu0 %vm649_vm0, %v648_v0  ;;  %470 = vmatprep.mubr.msk.bf16.mxu1 %vm649_vm0, %v648_v0  ;;  %v69_v7 = vld [vmem:[#allocation5] sm:$0x3]  ;;  %v703_v8 = vshrl.u32 %v90_v5, 7  ;;  %v529_v10 = vld [vmem:[#allocation8 + $0x10] sm:$0xff]   ;;  %v530_v14 = vld [vmem:[#allocation8 + $0x8] sm:$0xff]   ;;  %v357_v58 = vunpack.c.l.s4 %v650_v57  ;;  %s379_s3 = sshll.u32 %s651_s2, 4  ;;  %s380_s3 = int_to_ptr.vmem [resolvable:$true] %s379_s3 }
  0x35   :  { %435 = vmatpush3.bf16.msra.mxu0 %v524_v1  ;;  %455 = vmatpush3.bf16.msra.mxu1 %v524_v1  ;;  %v188_v9 = vshrl.u32 %v69_v7, 16  ;;  %v88_v11 = vpack.i.b16 %v69_v7, %v69_v7  ;;  %v531_v17 = vld [vmem:[#allocation8] sm:$0xff]   ;;  %v68_v18 = vld [vmem:[#allocation2] sm:$0x1]  ;;  %v70_v34 = vld [vmem:[#allocation7] sm:$0xf]  ;;  %p619_p7 = scmp.lt.s32.totalorder %s380_s3, %s380_s3 }
  0x36   :  { %436 = vmatprep.subr.bf16.mxu0 %v648_v0  ;;  %456 = vmatprep.subr.bf16.mxu1 %v648_v0  ;;  %v708_v12 = vsub.s32 0, %v703_v8  ;;  %v238_v21 = vsub.s32 1, %v703_v8  ;;  %v289_v37 = vsub.s32 2, %v703_v8  ;;  %v340_v38 = vsub.s32 3, %v703_v8  ;;  %s614_s10 = scalar_lea.vmem %s380_s3, 128 }
  0x37   :  { %v189_v13 = vpack.i.b16 %v188_v9, %v188_v9  ;;  %v358_v59 = vunpack.c.0.s8 %v357_v58  ;;  %p615_p6 = scmp.ne.s32.totalorder %s380_s3, %s614_s10  ;;  %p620_p8 = scmp.lt.s32.totalorder %s614_s10, %s614_s10 }
  0x38   :  { %v93_v15 = vrot.slane %v88_v11, %v708_v12  ;;  %v245_v22 = vrot.slane %v88_v11, %v238_v21  ;;  %v186_v35 = vrot.slane %v70_v34, %v708_v12  ;;  %v239_v36 = vrot.slane %v70_v34, %v238_v21 }
  0x39   :  { %437 = vmatpush3.bf16.msra.mxu0 %v525_v2  ;;  %457 = vmatpush3.bf16.msra.mxu1 %v525_v2  ;;  %v194_v16 = vrot.slane %v189_v13, %v708_v12  ;;  %v296_v23 = vrot.slane %v189_v13, %v238_v21  ;;  %v290_v41 = vrot.slane %v70_v34, %v289_v37  ;;  %p621_p9 = por %p620_p8, %p619_p7 }
  0x3a   :  { %438 = vmatprep.subr.bf16.mxu0 %v648_v0  ;;  %458 = vmatprep.subr.bf16.mxu1 %v648_v0  ;;  %v94_v19 = vmul.bf16 %v93_v15, %v68_v18  ;;  %v246_v24 = vmul.bf16 %v245_v22, %v68_v18  ;;  %v341_v42 = vrot.slane %v70_v34, %v340_v38 }
  0x3b   :  { %v195_v20 = vmul.bf16 %v194_v16, %v68_v18  ;;  %v297_v25 = vmul.bf16 %v296_v23, %v68_v18  ;;  %v361_v61 = vsub.s32 %v358_v59, %v703_v8  ;;  %p622_p10 = pnand %p621_p9, %p615_p6 }
  0x3d   :  { %439 = vmatpush3.bf16.msra.mxu0 %v526_v3  ;;  %459 = vmatpush3.bf16.msra.mxu1 %v526_v3 }
  0x3e   :  { %440 = vmatprep.subr.bf16.mxu0 %v648_v0  ;;  %460 = vmatprep.subr.bf16.mxu1 %v648_v0 }
  0x41   :  { %441 = vmatpush3.bf16.msra.mxu0 %v527_v4  ;;  %461 = vmatpush3.bf16.msra.mxu1 %v527_v4 }
  0x42   :  { %442 = vmatprep.subr.bf16.mxu0 %v648_v0  ;;  %462 = vmatprep.subr.bf16.mxu1 %v648_v0 }
  0x45   :  { %443 = vmatpush3.bf16.msra.mxu0 %v528_v6  ;;  %463 = vmatpush3.bf16.msra.mxu1 %v528_v6 }
  0x46   :  { %444 = vmatprep.subr.bf16.mxu0 %v648_v0  ;;  %464 = vmatprep.subr.bf16.mxu1 %v648_v0 }
  0x49   :  { %445 = vmatpush3.bf16.msra.mxu0 %v529_v10  ;;  %465 = vmatpush3.bf16.msra.mxu1 %v529_v10 }
  0x4a   :  { %446 = vmatprep.subr.bf16.mxu0 %v648_v0  ;;  %466 = vmatprep.subr.bf16.mxu1 %v648_v0 }
  0x4d   :  { %447 = vmatpush3.bf16.msra.mxu0 %v530_v14  ;;  %467 = vmatpush3.bf16.msra.mxu1 %v530_v14 }
  0x4e   :  { %448 = vmatprep.subr.bf16.mxu0 %v648_v0  ;;  %468 = vmatprep.subr.bf16.mxu1 %v648_v0 }
  0x51   :  { %449 = vmatpush3.bf16.msra.mxu0 %v531_v17  ;;  %469 = vmatpush3.bf16.msra.mxu1 %v531_v17 }
  0x52   :  { %474 = vmatprep.subr.bf16.mxu0 %v648_v0  ;;  %494 = vmatprep.subr.bf16.mxu1 %v648_v0 }
  0x54   :  { %451 = vmatmul.mubr.bf16.vlgmr.msra.gmra.mxu0 %v94_v19  ;;  %471 = vmatmul.mubr.bf16.vlgmr.msra.gmra.mxu1 %v195_v20 }
  0x55   :  { %475 = vmatpush3.bf16.msra.mxu0 %v524_v1  ;;  %495 = vmatpush3.bf16.msra.mxu1 %v524_v1 }
  0x56   :  { %476 = vmatprep.subr.bf16.mxu0 %v648_v0  ;;  %496 = vmatprep.subr.bf16.mxu1 %v648_v0 }
  0x57   :  { %490 = vmatprep.mubr.msk.bf16.mxu0 %vm649_vm0, %v648_v0  ;;  %510 = vmatprep.mubr.msk.bf16.mxu1 %vm649_vm0, %v648_v0 }
  0x59   :  { %477 = vmatpush3.bf16.msra.mxu0 %v525_v2  ;;  %497 = vmatpush3.bf16.msra.mxu1 %v525_v2 }
  0x5a   :  { %478 = vmatprep.subr.bf16.mxu0 %v648_v0  ;;  %498 = vmatprep.subr.bf16.mxu1 %v648_v0 }
  0x5d   :  { %479 = vmatpush3.bf16.msra.mxu0 %v526_v3  ;;  %499 = vmatpush3.bf16.msra.mxu1 %v526_v3 }
  0x5e   :  { %480 = vmatprep.subr.bf16.mxu0 %v648_v0  ;;  %500 = vmatprep.subr.bf16.mxu1 %v648_v0 }
  0x61   :  { %481 = vmatpush3.bf16.msra.mxu0 %v527_v4  ;;  %501 = vmatpush3.bf16.msra.mxu1 %v527_v4 }
  0x62   :  { %482 = vmatprep.subr.bf16.mxu0 %v648_v0  ;;  %502 = vmatprep.subr.bf16.mxu1 %v648_v0 }
  0x65   :  { %483 = vmatpush3.bf16.msra.mxu0 %v528_v6  ;;  %503 = vmatpush3.bf16.msra.mxu1 %v528_v6 }
  0x66   :  { %484 = vmatprep.subr.bf16.mxu0 %v648_v0  ;;  %504 = vmatprep.subr.bf16.mxu1 %v648_v0 }
  0x69   :  { %485 = vmatpush3.bf16.msra.mxu0 %v529_v10  ;;  %505 = vmatpush3.bf16.msra.mxu1 %v529_v10 }
  0x6a   :  { %486 = vmatprep.subr.bf16.mxu0 %v648_v0  ;;  %506 = vmatprep.subr.bf16.mxu1 %v648_v0 }
  0x6d   :  { %487 = vmatpush3.bf16.msra.mxu0 %v530_v14  ;;  %507 = vmatpush3.bf16.msra.mxu1 %v530_v14 }
  0x6e   :  { %488 = vmatprep.subr.bf16.mxu0 %v648_v0  ;;  %508 = vmatprep.subr.bf16.mxu1 %v648_v0 }
  0x71   :  { %489 = vmatpush3.bf16.msra.mxu0 %v531_v17  ;;  %509 = vmatpush3.bf16.msra.mxu1 %v531_v17 }
  0x74   :  { %491 = vmatmul.mubr.bf16.vlgmr.msra.gmra.mxu0 %v246_v24  ;;  %511 = vmatmul.mubr.bf16.vlgmr.msra.gmra.mxu1 %v297_v25 }
 0x114   :  { %v177_v26 = vpop.f32.mrf.mxu0  ;;  %v230_v27 = vpop.f32.mrf.mxu1 }
 0x115   :  { %v187_v39 = vmul.f32 %v186_v35, %v177_v26  ;;  %v240_v40 = vmul.f32 %v239_v36, %v230_v27 }
 0x116   :  { %v452_v28 = vpop.f32.mrf.mxu0  ;;  %v472_v29 = vpop.f32.mrf.mxu1 }
 0x117   :  { %v241_v45 = vadd.f32 %v240_v40, %v187_v39 }
 0x118   :  { %v180_v30 = vpop.f32.mrf.mxu0  ;;  %v233_v31 = vpop.f32.mrf.mxu1 }
 0x11a   :  { %v453_v32 = vpop.f32.mrf.mxu0  ;;  %v473_v33 = vpop.f32.mrf.mxu1 }
 0x134   :  { %v281_v43 = vpop.f32.mrf.mxu0  ;;  %v332_v44 = vpop.f32.mrf.mxu1 }
 0x135   :  { %v291_v46 = vmul.f32 %v290_v41, %v281_v43  ;;  %v342_v47 = vmul.f32 %v341_v42, %v332_v44 }
 0x136   :  { %v492_v48 = vpop.f32.mrf.mxu0  ;;  %v512_v49 = vpop.f32.mrf.mxu1 }
 0x137   :  { %v292_v50 = vadd.f32 %v291_v46, %v241_v45 }
 0x138   :  { %v284_v51 = vpop.f32.mrf.mxu0  ;;  %v335_v52 = vpop.f32.mrf.mxu1 }
 0x139   :  { %v343_v53 = vadd.f32 %v342_v47, %v292_v50 }
 0x13a   :  { %v493_v54 = vpop.f32.mrf.mxu0  ;;  %v513_v55 = vpop.f32.mrf.mxu1 }
 0x13b   :  { %v344_v56 = vadd.f32 1e-09, %v343_v53 }
 0x13d   :  { %532 = vrcp.f32 %v344_v56 }
 0x14a   :  { %v533_v60 = vpop.eup %532 }
 0x14b   :  { %v348_v62 = vmul.f32 %v533_v60, %v291_v46  ;;  %v349_v63 = vmul.f32 %v533_v60, %v342_v47  ;;  %v346_v0 = vmul.f32 %v533_v60, %v187_v39  ;;  %v347_v1 = vmul.f32 %v533_v60, %v240_v40 }
 0x14d   :  { %v355_v2 = vcombine.low %v348_v62, %v349_v63  ;;  %v354_v3 = vcombine.low %v346_v0, %v347_v1 }
 0x14f   :  { %v362_v4 = vrot.slane %v354_v3, %v361_v61  ;;  %v369_v5 = vrot.slane %v355_v2, %v361_v61 }
 0x151   :  { %v370_v6 = vcombine.low %v362_v4, %v369_v5 }
 0x153   :  { %372 = vst [vmem:[#allocation10] sm:$0xff] %v370_v6 }
 0x154   :  { %625 = shalt.err (!%p622_p10)
}
 0x155   :  { %382 = dma.vmem_to_hbm [thread:$0]  %s380_s3, 128, %s748_s4, [#allocation4]  }
 0x156   :  { %640 = dma.done.wait [#allocation4], 128  }
 0x157   :  { %641 = vsyncadd [#allocation4], 4294967168 }
 0x158   :  { %386 = vsyncpa [#allocation3], 1 }
 0x159   :  { %387 = vsyncpa [#allocation6], 1 }
 0x15a   :  { %388 = vsyncpa [#allocation9], 1 }
 0x15b   :  { %389 = vsyncpa [#allocation4], 1 }

</bundles_post_ra>
